<compile_context>
chip_gen: v7x
topology: tpu7x:2x2x1
jax: 0.10.0
libtpu: 0.0.40
codegen_flags: <defaults>
</compile_context>

<pallas_src>
import functools

import jax
import jax.numpy as jnp
from jax import lax
from jax.experimental import pallas as pl
from jax.experimental.pallas import tpu as pltpu

EPS = 1e-5  # nn.BatchNorm2d default eps


# --------------------------------------------------------------------------
# helpers
# --------------------------------------------------------------------------
def _vmem_budget_bytes():
    """Per-generation scoped-VMEM budget (headroom below physical VMEM)."""
    default = 40 * 1024 * 1024                      # safe on v5e/v6e/v7x
    try:
        info = pltpu.get_tpu_info()
        cap = getattr(info, "vmem_capacity_bytes", None)
        if not cap:
            return default
        # ~70% of physical: ~90 MiB on v5e/v6e (128 MiB), ~45 MiB on v7x (64 MiB)
        return max(32 * 1024 * 1024, min(int(cap * 0.7), 96 * 1024 * 1024))
    except Exception:
        return default


def _sublane_unit(dtype):
    """Channel-tile granularity: 8 for f32, 16 for bf16, 32 for int8/fp8."""
    return max(8, 32 // max(1, jnp.dtype(dtype).itemsize))


def _divisor_tile(dim, unit, cap):
    """Largest divisor of `dim` that is a multiple of `unit` and <= cap, or None."""
    best = None
    cap = min(cap, dim)
    t = unit
    while t <= cap:
        if dim % t == 0:
            best = t
        t += unit
    return best


# --------------------------------------------------------------------------
# fused single-pass kernel (channel-block slab resident in VMEM)
# --------------------------------------------------------------------------
def _bn_fused_kernel(gamma_ref, beta_ref, x_ref, o_ref, *, eps):
    """x_ref: (N, c_tile, HW) full slab.  1 HBM read + 1 HBM write of x."""
    x = x_ref[...].astype(jnp.float32)
    cnt = x.shape[0] * x.shape[2]
    inv_cnt = 1.0 / float(cnt)
    # mean-then-centered second moment (numerically safe; VMEM-resident data).
    mean = jnp.sum(jnp.sum(x, axis=2, keepdims=True), axis=0, keepdims=True) * inv_cnt
    xc = x - mean
    var = jnp.sum(jnp.sum(xc * xc, axis=2, keepdims=True), axis=0, keepdims=True) * inv_cnt
    scale = gamma_ref[...].astype(jnp.float32) * lax.rsqrt(var + eps)
    shift = beta_ref[...].astype(jnp.float32) - mean * scale
    o_ref[...] = (x * scale + shift).astype(o_ref.dtype)


# --------------------------------------------------------------------------
# streaming two-pass kernels
# --------------------------------------------------------------------------
def _bn_stats_kernel(gamma_ref, beta_ref, x_ref, scale_ref, shift_ref,
                     mean_sc, m2_sc, *, eps, hw_valid, hw_tile):
    """Pass 1: per-channel batch stats -> fused (scale, shift).

    x_ref: (c_tile, hw_tile); grid = (c_blocks, N, hw_blocks), reductions last.
    HW may be zero-padded in HBM: sums are unaffected, counts use `hw_valid`.
    """
    n_i = pl.program_id(1)
    hw_i = pl.program_id(2)
    hw_num = pl.num_programs(2)
    n_steps = pl.num_programs(1) * hw_num
    step = n_i * hw_num + hw_i

    @pl.when(step == 0)
    def _():
        mean_sc[...] = jnp.zeros_like(mean_sc)
        m2_sc[...] = jnp.zeros_like(m2_sc)

    x = x_ref[...].astype(jnp.float32)

    if hw_valid % hw_tile != 0:                       # static: ragged last tile
        tile_cnt = jnp.minimum(hw_tile, hw_valid - hw_i * hw_tile).astype(jnp.float32)
    else:
        tile_cnt = jnp.float32(hw_tile)

    # Per-tile sum / sum-of-squares: 1 VPU mul/elem + 2 XLU reduces.
    # E[x^2]-E[x]^2 cancellation is confined to one tile (<= 8192 elements).
    tile_sum = jnp.sum(x, axis=-1, keepdims=True)
    tile_sumsq = jnp.sum(x * x, axis=-1, keepdims=True)
    tile_mean = tile_sum / tile_cnt
    tile_m2 = tile_sumsq - tile_sum * tile_mean

    # Chan / Welford pairwise combine across tiles.  Every earlier hw tile in
    # a row is full-sized (only the last can be ragged), so the running count
    # is exact and needs no scratch.
    cnt_a = (n_i.astype(jnp.float32) * jnp.float32(hw_valid)
             + hw_i.astype(jnp.float32) * jnp.float32(hw_tile))
    cnt_ab = cnt_a + tile_cnt
    delta = tile_mean - mean_sc[...]
    mean_sc[...] = mean_sc[...] + delta * (tile_cnt / cnt_ab)
    m2_sc[...] = m2_sc[...] + tile_m2 + (delta * delta) * (cnt_a * tile_cnt / cnt_ab)

    @pl.when(step == n_steps - 1)
    def _():
        # Biased variance, matching PyTorch's normalization statistics.
        var = jnp.maximum(m2_sc[...] / cnt_ab, 0.0)
        scale = gamma_ref[...].astype(jnp.float32) * lax.rsqrt(var + eps)
        scale_ref[...] = scale
        shift_ref[...] = beta_ref[...].astype(jnp.float32) - mean_sc[...] * scale


def _bn_apply_kernel(scale_ref, shift_ref, x_ref, o_ref):
    """Pass 2: y = x * scale + shift (per-channel broadcast along lanes)."""
    x = x_ref[...].astype(jnp.float32)
    o_ref[...] = (x * scale_ref[...] + shift_ref[...]).astype(o_ref.dtype)


# --------------------------------------------------------------------------
# wrapper
# --------------------------------------------------------------------------
def batchnorm2d_pallas(x_nchw, gamma, beta, eps=EPS, allow_fused=True):
    """BatchNorm2d forward (training-mode batch statistics) on TPU.

    x_nchw: (N, C, H, W); gamma, beta: (C,).  Returns (N, C, H, W).
    """
    n, c, h, w = x_nchw.shape
    hw = h * w
    x3 = x_nchw.reshape(n, c, hw)                     # contiguous view, no HBM transpose
    itemsize = jnp.dtype(x_nchw.dtype).itemsize
    unit = _sublane_unit(x_nchw.dtype)
    budget = _vmem_budget_bytes()
    x_bytes = x3.size * itemsize

    # ---------------- fused single pass (1 read + 1 write of x) -------------
    if allow_fused:
        slab_f32_per_ch = n * hw * 4
        max_ct = budget // (8 * slab_f32_per_ch) if slab_f32_per_ch else 0
        if max_ct >= 1:
            cap = min(c, max_ct)
            if c >= 2 * unit:
                cap = min(cap, c // 2)                # >=2 blocks: both v7x TCs work
            c_tile = _divisor_tile(c, unit, cap)
            if c_tile is None and c <= max_ct:
                c_tile = c                            # full-C slab still fits
            if c_tile is not None:
                c_blocks = c // c_tile
                g3 = gamma.reshape(1, c, 1).astype(jnp.float32)
                b3 = beta.reshape(1, c, 1).astype(jnp.float32)
                slab_spec = pl.BlockSpec((n, c_tile, hw), lambda ci: (0, ci, 0))
                par_spec = pl.BlockSpec((1, c_tile, 1), lambda ci: (0, ci, 0))
                out3 = pl.pallas_call(
                    functools.partial(_bn_fused_kernel, eps=eps),
                    out_shape=jax.ShapeDtypeStruct((n, c, hw), x_nchw.dtype),
                    grid_spec=pltpu.PrefetchScalarGridSpec(
                        num_scalar_prefetch=0,
                        grid=(c_blocks,),
                        in_specs=[par_spec, par_spec, slab_spec],
                        out_specs=slab_spec),
                    compiler_params=pltpu.CompilerParams(
                        dimension_semantics=("parallel",),
                        vmem_limit_bytes=budget),
                    cost_estimate=pl.CostEstimate(
                        flops=7 * x3.size, transcendentals=c,
                        bytes_accessed=2 * x_bytes + 12 * c),
                )(g3, b3, x3)
                return out3.reshape(n, c, h, w)

    # ---------------- streaming two-pass fallback (2 reads + 1 write) -------
    block_cap = min(4 * 1024 * 1024, budget // 10)    # ~4 MiB x-blocks

    # Lane-dense HW tiles.  If HW > 128 and not a multiple of 128, pad it once
    # in HBM (padding is zeros, so sums are unaffected; counts use true HW).
    hw_valid = hw
    if hw > 128 and hw % 128 != 0:
        hw_pad = -(-hw // 128) * 128
        x_in = jnp.pad(x3, ((0, 0), (0, 0), (0, hw_pad - hw)))
    else:
        hw_pad = hw
        x_in = x3
    if hw_pad <= 128:
        hw_tile = hw_pad
    else:
        hw_tile = _divisor_tile(hw_pad, 128, 8192) or 128
    hw_blocks = hw_pad // hw_tile

    # Channel tiles: dtype-aware sublane unit; keep >=2 blocks when possible
    # (v7x stats parallelism) and the x block within ~block_cap bytes.
    c_cap = max(unit, block_cap // max(1, hw_tile * itemsize))
    if c >= 2 * unit:
        c_cap = min(c_cap, c // 2)
    c_tile = _divisor_tile(c, unit, c_cap)
    if c_tile is None:
        c_tile = c                                    # full-C fallback (legal block)
        if c_tile * hw_tile * itemsize > 2 * block_cap and hw_tile > 128:
            new_cap = max(128, (2 * block_cap) // (c_tile * itemsize))
            hw_tile = _divisor_tile(hw_pad, 128, new_cap) or 128
            hw_blocks = hw_pad // hw_tile
    c_blocks = c // c_tile

    g2 = gamma.reshape(c, 1).astype(jnp.float32)
    b2 = beta.reshape(c, 1).astype(jnp.float32)
    stat_spec = pl.BlockSpec((c_tile, 1), lambda ci, ni, hi: (ci, 0))
    x_spec = pl.BlockSpec((None, c_tile, hw_tile), lambda ci, ni, hi: (ni, ci, hi))

    # Pass 1: per-channel scale/shift from batch statistics.
    scale, shift = pl.pallas_call(
        functools.partial(_bn_stats_kernel, eps=eps, hw_valid=hw_valid, hw_tile=hw_tile),
        out_shape=(jax.ShapeDtypeStruct((c, 1), jnp.float32),
                   jax.ShapeDtypeStruct((c, 1), jnp.float32)),
        grid_spec=pltpu.PrefetchScalarGridSpec(
            num_scalar_prefetch=0,
            grid=(c_blocks, n, hw_blocks),            # reduction axes last
            in_specs=[stat_spec, stat_spec, x_spec],
            out_specs=[stat_spec, stat_spec],
            scratch_shapes=[pltpu.VMEM((c_tile, 1), jnp.float32),
                            pltpu.VMEM((c_tile, 1), jnp.float32)]),
        compiler_params=pltpu.CompilerParams(
            dimension_semantics=("parallel", "arbitrary", "arbitrary"),
            vmem_limit_bytes=budget),
        cost_estimate=pl.CostEstimate(
            flops=3 * x_in.size, transcendentals=c,
            bytes_accessed=x_in.size * itemsize + 16 * c),
    )(g2, b2, x_in)

    # Pass 2: y = x * scale + shift (fully parallel elementwise map).
    out3 = pl.pallas_call(
        _bn_apply_kernel,
        out_shape=jax.ShapeDtypeStruct((n, c, hw_pad), x_nchw.dtype),
        grid_spec=pltpu.PrefetchScalarGridSpec(
            num_scalar_prefetch=0,
            grid=(c_blocks, n, hw_blocks),
            in_specs=[stat_spec, stat_spec, x_spec],
            out_specs=x_spec),
        compiler_params=pltpu.CompilerParams(
            dimension_semantics=("parallel", "parallel", "parallel"),
            vmem_limit_bytes=budget),
        cost_estimate=pl.CostEstimate(
            flops=2 * x_in.size, transcendentals=0,
            bytes_accessed=2 * x_in.size * itemsize + 8 * c),
    )(scale, shift, x_in)

    if hw_pad != hw:
        out3 = out3[:, :, :hw]

    # TODO(synk): running_mean / running_var buffers of nn.BatchNorm2d are not
    # updated (only the normalized forward output is produced).
    return out3.reshape(n, c, h, w)


if __name__ == "__main__":
    key = jax.random.PRNGKey(0)
    N, C, H, W = 2, 4, 16, 16
    kx, kg, kb = jax.random.split(key, 3)
    x = jax.random.normal(kx, (N, C, H, W), dtype=jnp.float32)

    # nn.BatchNorm2d default init is weight=1, bias=0; perturb slightly so the
    # affine path is actually exercised.
    gamma = jnp.ones((C,), jnp.float32) + 0.1 * jax.random.normal(kg, (C,), jnp.float32)
    beta = 0.1 * jax.random.normal(kb, (C,), jnp.float32)

    def ref_bn(xx, g, b):
        mean = jnp.mean(xx, axis=(0, 2, 3), keepdims=True)
        var = jnp.var(xx, axis=(0, 2, 3), keepdims=True)
        return ((xx - mean) / jnp.sqrt(var + EPS)) * g.reshape(1, -1, 1, 1) \
            + b.reshape(1, -1, 1, 1)

    ref = ref_bn(x, gamma, beta)

    # Fused single-pass path (default for small slabs).
    out_fused = jax.block_until_ready(batchnorm2d_pallas(x, gamma, beta))
    assert jnp.allclose(out_fused, ref, atol=2e-5, rtol=2e-5), "fused path mismatch"

    # Streaming two-pass fallback path.
    out_2p = jax.block_until_ready(batchnorm2d_pallas(x, gamma, beta, allow_fused=False))
    assert jnp.allclose(out_2p, ref, atol=2e-5, rtol=2e-5), "two-pass path mismatch"

    # Ragged spatial extent (H*W not a multiple of 128) exercises the padded /
    # true-count path of the two-pass kernels.
    Hr, Wr = 15, 15
    xr = jax.random.normal(kx, (N, C, Hr, Wr), dtype=jnp.float32)
    out_r = jax.block_until_ready(batchnorm2d_pallas(xr, gamma, beta, allow_fused=False))
    assert jnp.allclose(out_r, ref_bn(xr, gamma, beta), atol=2e-5, rtol=2e-5), \
        "ragged two-pass path mismatch"

    print("KERNEL_OK")
</pallas_src>

<mosaic_0001>
module attributes {stable_mosaic.version = 11 : i64} {
  func.func @_bn_fused_kernel(%arg0: i32, %arg1: memref<1x4x1xf32, #tpu.memory_space<vmem>>, %arg2: memref<1x4x1xf32, #tpu.memory_space<vmem>>, %arg3: memref<2x4x256xf32, #tpu.memory_space<vmem>>, %arg4: memref<2x4x256xf32, #tpu.memory_space<vmem>>) attributes {dimension_semantics = [#tpu.dimension_semantics<parallel>], iteration_bounds = array<i64: 1>, scalar_prefetch = 0 : i64, scratch_operands = 0 : i64, tpu.core_type = #tpu.core_type<tc>, window_params = [{transform_indices = @transform_0, window_bounds = array<i64: 1, 4, 1>}, {transform_indices = @transform_1, window_bounds = array<i64: 1, 4, 1>}, {transform_indices = @transform_2, window_bounds = array<i64: 2, 4, 256>}, {transform_indices = @transform_3, window_bounds = array<i64: 2, 4, 256>}]} {
    %c0 = arith.constant 0 : index
    %c0_0 = arith.constant 0 : index
    %c0_1 = arith.constant 0 : index
    %0 = vector.load %arg3[%c0, %c0_0, %c0_1] : memref<2x4x256xf32, #tpu.memory_space<vmem>>, vector<2x4x256xf32>
    %cst = arith.constant dense<0.000000e+00> : vector<2x4xf32>
    %1 = vector.multi_reduction <add>, %0, %cst [2] : vector<2x4x256xf32> to vector<2x4xf32>
    %2 = vector.shape_cast %1 : vector<2x4xf32> to vector<2x4x1xf32>
    %cst_2 = arith.constant dense<0.000000e+00> : vector<4x1xf32>
    %3 = vector.multi_reduction <add>, %2, %cst_2 [0] : vector<2x4x1xf32> to vector<4x1xf32>
    %4 = vector.shape_cast %3 : vector<4x1xf32> to vector<1x4x1xf32>
    %cst_3 = arith.constant 0.001953125 : f32
    %5 = vector.broadcast %cst_3 : f32 to vector<1x4x1xf32>
    %6 = arith.mulf %4, %5 : vector<1x4x1xf32>
    %7 = vector.broadcast %6 : vector<1x4x1xf32> to vector<2x4x256xf32>
    %8 = arith.subf %0, %7 : vector<2x4x256xf32>
    %9 = arith.mulf %8, %8 : vector<2x4x256xf32>
    %cst_4 = arith.constant dense<0.000000e+00> : vector<2x4xf32>
    %10 = vector.multi_reduction <add>, %9, %cst_4 [2] : vector<2x4x256xf32> to vector<2x4xf32>
    %11 = vector.shape_cast %10 : vector<2x4xf32> to vector<2x4x1xf32>
    %cst_5 = arith.constant dense<0.000000e+00> : vector<4x1xf32>
    %12 = vector.multi_reduction <add>, %11, %cst_5 [0] : vector<2x4x1xf32> to vector<4x1xf32>
    %13 = vector.shape_cast %12 : vector<4x1xf32> to vector<1x4x1xf32>
    %cst_6 = arith.constant 0.001953125 : f32
    %14 = vector.broadcast %cst_6 : f32 to vector<1x4x1xf32>
    %15 = arith.mulf %13, %14 : vector<1x4x1xf32>
    %c0_7 = arith.constant 0 : index
    %c0_8 = arith.constant 0 : index
    %c0_9 = arith.constant 0 : index
    %16 = vector.load %arg1[%c0_7, %c0_8, %c0_9] : memref<1x4x1xf32, #tpu.memory_space<vmem>>, vector<1x4x1xf32>
    %cst_10 = arith.constant 9.99999974E-6 : f32
    %17 = vector.broadcast %cst_10 : f32 to vector<1x4x1xf32>
    %18 = arith.addf %15, %17 : vector<1x4x1xf32>
    %19 = math.rsqrt %18 : vector<1x4x1xf32>
    %20 = arith.mulf %16, %19 : vector<1x4x1xf32>
    %c0_11 = arith.constant 0 : index
    %c0_12 = arith.constant 0 : index
    %c0_13 = arith.constant 0 : index
    %21 = vector.load %arg2[%c0_11, %c0_12, %c0_13] : memref<1x4x1xf32, #tpu.memory_space<vmem>>, vector<1x4x1xf32>
    %22 = arith.mulf %6, %20 : vector<1x4x1xf32>
    %23 = arith.subf %21, %22 : vector<1x4x1xf32>
    %24 = vector.broadcast %20 : vector<1x4x1xf32> to vector<2x4x256xf32>
    %25 = arith.mulf %0, %24 : vector<2x4x256xf32>
    %26 = vector.broadcast %23 : vector<1x4x1xf32> to vector<2x4x256xf32>
    %27 = arith.addf %25, %26 : vector<2x4x256xf32>
    %c0_14 = arith.constant 0 : index
    %c0_15 = arith.constant 0 : index
    %c0_16 = arith.constant 0 : index
    %28 = vector.load %arg4[%c0_14, %c0_15, %c0_16] : memref<2x4x256xf32, #tpu.memory_space<vmem>>, vector<2x4x256xf32>
    tpu.vector_store %arg4[%c0_14, %c0_15, %c0_16], %27 {strides = array<i32>} : memref<2x4x256xf32, #tpu.memory_space<vmem>>, vector<2x4x256xf32>,
    return
  }
  func.func @transform_0(%arg0: i32) -> (i32, i32, i32) {
    %c0_i32 = arith.constant 0 : i32
    %c0_i32_0 = arith.constant 0 : i32
    %c0_i32_1 = arith.constant 0 : i32
    return %c0_i32, %arg0, %c0_i32_0 : i32, i32, i32
  }
  func.func @transform_1(%arg0: i32) -> (i32, i32, i32) {
    %c0_i32 = arith.constant 0 : i32
    %c0_i32_0 = arith.constant 0 : i32
    %c0_i32_1 = arith.constant 0 : i32
    return %c0_i32, %arg0, %c0_i32_0 : i32, i32, i32
  }
  func.func @transform_2(%arg0: i32) -> (i32, i32, i32) {
    %c0_i32 = arith.constant 0 : i32
    %c0_i32_0 = arith.constant 0 : i32
    %c0_i32_1 = arith.constant 0 : i32
    return %c0_i32, %arg0, %c0_i32_0 : i32, i32, i32
  }
  func.func @transform_3(%arg0: i32) -> (i32, i32, i32) {
    %c0_i32 = arith.constant 0 : i32
    %c0_i32_0 = arith.constant 0 : i32
    %c0_i32_1 = arith.constant 0 : i32
    return %c0_i32, %arg0, %c0_i32_0 : i32, i32, i32
  }
}

</mosaic_0001>

<bundles_post_ra>
// kernel: tpu_custom_call.1
= control target key start
LH: loop header
LB: loop body
LE: loop exit
PB: predicated region body
PF: predicated region fallthrough
CT: control target
= control target key end

     0   :  { %vm23_vm0 = vcmask 1043456   ;;  %s234_s0 = inlined_call_operand.vmem [shape: f32[1,4,1], index: 0, kind: input, shape index: {}]   ;;  %s235_s1 = inlined_call_operand.vmem [shape: f32[1,4,1], index: 1, kind: input, shape index: {}]   ;;  %s236_s2 = inlined_call_operand.vmem [shape: f32[2,4,256], index: 2, kind: input, shape index: {}]   ;;  %s237_s3 = inlined_call_operand.hbm [shape: f32[2,4,256], index: 3, kind: output, shape index: {}]  }
   0x1   :  { %v187_v0 = vld [vmem:[%s236_s2] sm:$0xff]  ;;  %v192_v1 = vld [vmem:[%s236_s2 + $0x8] sm:$0xff] }
   0x2   :  { %8 = vsyncpa [#allocation3], 0  ;;  %v19_v2 = vcombine.high %v187_v0, %v187_v0  ;;  %v24_v3 = vsel %vm23_vm0, %v187_v0, 0.0  ;;  %v20_v4 = vcombine.high %v192_v1, %v192_v1  ;;  %v29_v6 = vsel %vm23_vm0, %v192_v1, 0.0  ;;  %v71_v43 = vld [vmem:[%s234_s0] sm:$0xf] }
   0x3   :  { %v159_v10 = vmov 839922192   ;;  %v42_v12 = vlaneseq  ;;  %v160_v35 = vmov 0   ;;  %v75_v46 = vld [vmem:[%s235_s1] sm:$0xf]  ;;  %s161_s19 = smov [#allocation2]  }
   0x4   :  { %v25_v5 = vsel %vm23_vm0, %v19_v2, 0.0  ;;  %v30_v7 = vsel %vm23_vm0, %v20_v4, 0.0  ;;  %v40_v11 = vunpack.c.l.s4 %v159_v10  ;;  %129 = vset.pattern.permute.xlu0 %v160_v35  ;;  %130 = vset.pattern.permute.xlu1 %v160_v35  ;;  %s113_s20 = sshll.u32 %s161_s19, 4  ;;  %s114_s20 = int_to_ptr.vmem [resolvable:$true] %s113_s20 }
   0x5   :  { %v26_v8 = vadd.f32 %v25_v5, %v24_v3  ;;  %v31_v9 = vadd.f32 %v30_v7, %v29_v6  ;;  %v43_v15 = vshrl.u32 %v42_v12, 7  ;;  %s135_s0 = scalar_lea.vmem %s114_s20, 256  ;;  %p140_p1 = scmp.lt.s32.totalorder %s114_s20, %s114_s20 }
   0x6   :  { %v41_v14 = vunpack.c.0.s8 %v40_v11  ;;  %p136_p0 = scmp.ne.s32.totalorder %s114_s20, %s135_s0  ;;  %p141_p2 = scmp.lt.s32.totalorder %s135_s0, %s135_s0 }
   0x7   :  { %27 = vadd.xlane.f32.xlu0 %v26_v8 }
   0x8   :  { %v44_v19 = vsub.s32 %v41_v14, %v43_v15  ;;  %p142_p3 = por %p141_p2, %p140_p1 }
   0xa   :  { %p143_p4 = pnand %p142_p3, %p136_p0 }
   0xb   :  { %32 = vadd.xlane.f32.xlu0 %v31_v9 }
  0x94   :  { %v28_v13 = vpop.xlane.xlu0 %27 }
  0x95   :  { %v34_v17 = vsel %vm23_vm0, %v28_v13, 0.0 }
  0x98   :  { %v33_v16 = vpop.xlane.xlu0 %32 }
  0x99   :  { %v35_v18 = vsel %vm23_vm0, %v33_v16, 0.0 }
  0x9a   :  { %v36_v20 = vadd.f32 %v35_v18, %v34_v17 }
  0x9c   :  { %v37_v21 = vmul.f32 0.001953125, %v36_v20 }
  0x9e   :  { %v45_v22 = vrot.slane %v37_v21, %v44_v19 }
  0xa0   :  { %v47_v23 = vsub.f32 %v187_v0, %v45_v22  ;;  %v48_v24 = vsub.f32 %v192_v1, %v45_v22 }
  0xa2   :  { %v49_v25 = vmul.f32 %v47_v23, %v47_v23  ;;  %v50_v26 = vmul.f32 %v48_v24, %v48_v24 }
  0xa4   :  { %v53_v27 = vcombine.high %v49_v25, %v49_v25  ;;  %v54_v28 = vcombine.high %v50_v26, %v50_v26  ;;  %v57_v29 = vsel %vm23_vm0, %v49_v25, 0.0  ;;  %v62_v33 = vsel %vm23_vm0, %v50_v26, 0.0 }
  0xa6   :  { %v58_v30 = vsel %vm23_vm0, %v53_v27, 0.0  ;;  %v63_v32 = vsel %vm23_vm0, %v54_v28, 0.0 }
  0xa7   :  { %v59_v31 = vadd.f32 %v58_v30, %v57_v29  ;;  %v64_v34 = vadd.f32 %v63_v32, %v62_v33 }
  0xa9   :  { %60 = vadd.xlane.f32.xlu1 %v59_v31 }
  0xad   :  { %65 = vadd.xlane.f32.xlu1 %v64_v34 }
 0x136   :  { %v61_v36 = vpop.xlane.xlu1 %60 }
 0x137   :  { %v67_v38 = vsel %vm23_vm0, %v61_v36, 0.0 }
 0x13a   :  { %v66_v37 = vpop.xlane.xlu1 %65 }
 0x13b   :  { %v68_v39 = vsel %vm23_vm0, %v66_v37, 0.0 }
 0x13c   :  { %v69_v40 = vadd.f32 %v68_v39, %v67_v38 }
 0x13e   :  { %v70_v41 = vmul.f32 0.001953125, %v69_v40 }
 0x140   :  { %v72_v42 = vadd.f32 1e-05, %v70_v41 }
 0x142   :  { %133 = vrsqrt.f32 %v72_v42 }
 0x14c   :  { %v134_v44 = vpop.eup %133 }
 0x14d   :  { %v74_v45 = vmul.f32 %v134_v44, %v71_v43 }
 0x14f   :  { %80 = vperm.xlu0 %129, %v74_v45   ;;  %v76_v47 = vmul.f32 %v74_v45, %v37_v21 }
 0x151   :  { %v77_v48 = vsub.f32 %v75_v46, %v76_v47 }
 0x153   :  { %94 = vperm.xlu1 %130, %v77_v48  }
 0x1ce   :  { %v81_v49 = vpop.permute.xlu0 %80 }
 0x1cf   :  { %v88_v50 = vrot.slane %v81_v49, %v44_v19 }
 0x1d1   :  { %v90_v52 = vmul.f32 %v88_v50, %v187_v0  ;;  %v91_v53 = vmul.f32 %v88_v50, %v192_v1 }
 0x1d2   :  { %v95_v51 = vpop.permute.xlu1 %94 }
 0x1d3   :  { %v102_v54 = vrot.slane %v95_v51, %v44_v19 }
 0x1d5   :  { %v104_v55 = vadd.f32 %v102_v54, %v90_v52  ;;  %v105_v56 = vadd.f32 %v102_v54, %v91_v53 }
 0x1d7   :  { %106 = vst [vmem:[#allocation2] sm:$0xff] %v104_v55  ;;  %107 = vst [vmem:[#allocation2 + $0x8] sm:$0xff] %v105_v56 }
 0x1d8   :  { %146 = shalt.err (!%p143_p4)
}
 0x1d9   :  { %s147_s22 = scalar_lea.hbm %s237_s3, 256 }
 0x1da   :  { %p148_p5 = scmp.ne.s32.totalorder %s237_s3, %s147_s22  ;;  %p151_p6 = scmp.lt.u32.totalorder %s147_s22, %s237_s3 }
 0x1dc   :  { %p153_p7 = pnand %p151_p6, %p148_p5 }
 0x1de   :  { %156 = shalt.err (!%p153_p7)
}
 0x1df   :  { %s162_s27 = smov 128   ;;  %s163_s28 = smov 8  }
 0x1e0   :  { %119 = dma.vmem_to_hbm [thread:$0]  %s114_s20, 256, %s237_s3, [#allocation3], %s162_s27, %s162_s27, %s163_s28  }
 0x1e1   :  { %157 = dma.done.wait [#allocation3], 256  }
 0x1e2   :  { %158 = vsyncadd [#allocation3], 4294967040 }
 0x1e3   :  { %123 = vsyncpa [#allocation3], 1 }

</bundles_post_ra>
